<compile_context>
chip_gen: v7x
topology: tpu7x:2x2x1
jax: 0.10.0
libtpu: 0.0.40
codegen_flags: <defaults>
</compile_context>

<pallas_src>
import math
import functools

import jax
import jax.numpy as jnp
from jax import lax
from jax.experimental import pallas as pl
from jax.experimental.pallas import tpu as pltpu


# ---------------------------------------------------------------------------
# Fused Pallas kernel: one batch element per grid step, everything in VMEM
# ---------------------------------------------------------------------------

def _mhca_fused_kernel(x_ref, ctx_ref, wq_ref, bq_ref, wkv_ref, bkv_ref,
                       wp_ref, bp_ref, o_ref, q_sc, kv_sc, attn_sc,
                       *, num_heads):
    # Block views (leading batch dim squeezed away by BlockSpec):
    #   x_ref   (N, C)  bf16      ctx_ref (M, C)  bf16
    #   wq_ref  (C, C)  bf16      bq_ref  (1, C)  f32   (1/sqrt(D) folded in)
    #   wkv_ref (C, 2C) bf16      bkv_ref (1, 2C) f32
    #   wp_ref  (C, C)  bf16      bp_ref  (1, C)  f32
    #   o_ref   (N, C)  out dtype
    #   q_sc    (N, C)  bf16      kv_sc (M, 2C) bf16     attn_sc (N, C) f32
    N, C = x_ref.shape
    H = num_heads
    D = C // H

    # Input projections on the MXU: bf16 operands, f32 accumulation, f32 bias.
    # Results land in bf16 VMEM scratch (they are MXU operands downstream).
    q_sc[...] = (jnp.dot(x_ref[...], wq_ref[...],
                         preferred_element_type=jnp.float32)
                 + bq_ref[...]).astype(q_sc.dtype)
    kv_sc[...] = (jnp.dot(ctx_ref[...], wkv_ref[...],
                          preferred_element_type=jnp.float32)
                  + bkv_ref[...]).astype(kv_sc.dtype)
    # kv lane layout follows '(K H D)': [k_h0 .. k_h{H-1} | v_h0 .. v_h{H-1}]

    # Per-head scaled-dot-product attention. Each head's (N, D) result is
    # stored straight into the attn scratch slab, so per-head intermediates do
    # not stay live across heads and the projection reads one lane-dense
    # (N, C) operand (no concatenate / lane repacking).
    # Production note: keep head boundaries 128-lane aligned (D multiple of
    # 128, or group heads) to avoid masked lane selects on these slices.
    # TODO(synk): for long contexts (M >~ 4K) tile over M with a flash-style
    # online softmax (running m/l/acc) so the (N, M) scores never materialize,
    # and add an N-tile grid axis / multi-batch blocks for v7x's 64 MiB VMEM.
    for h in range(H):
        qh = q_sc[:, h * D:(h + 1) * D]               # (N, D) bf16
        kh = kv_sc[:, h * D:(h + 1) * D]              # (M, D) bf16
        vh = kv_sc[:, C + h * D:C + (h + 1) * D]      # (M, D) bf16

        # s = qh @ kh^T (contract over D); scale already folded into Wq/bq.
        # Scores and all softmax statistics stay in f32 (VPU/EUP work).
        s = lax.dot_general(qh, kh, (((1,), (1,)), ((), ())),
                            preferred_element_type=jnp.float32)        # (N, M)
        m = jnp.max(s, axis=-1, keepdims=True)
        p = jnp.exp(s - m)
        denom = jnp.sum(p, axis=-1, keepdims=True)

        # PV matmul on unnormalized probabilities (bf16 operand, f32 acc),
        # then normalize the small (N, D) result with the exact reciprocal.
        o_h = jnp.dot(p.astype(kv_sc.dtype), vh,
                      preferred_element_type=jnp.float32)               # (N, D)
        attn_sc[:, h * D:(h + 1) * D] = o_h * pl.reciprocal(denom)

    # Output projection; proj_drop(p=0.0) is identity.
    out = jnp.dot(attn_sc[...].astype(wp_ref.dtype), wp_ref[...],
                  preferred_element_type=jnp.float32) + bp_ref[...]
    o_ref[...] = out.astype(o_ref.dtype)


def multi_head_cross_attention(params, x, context, num_heads):
    """Fused MHCA forward: a single pallas_call gridded over batch."""
    B, N, C = x.shape
    Bc, M, Cc = context.shape
    assert B == Bc and C == Cc and C % num_heads == 0
    D = C // num_heads
    scale = 1.0 / math.sqrt(D)
    out_dtype = x.dtype

    # bf16 MXU operands (inputs + weights, half the DMA / residency); biases
    # stay f32 and are added to the f32 accumulators. The 1/sqrt(D) scale is
    # folded into Wq/bq (softmax is invariant to scaling q vs the scores).
    xw = x.astype(jnp.bfloat16)
    cw = context.astype(jnp.bfloat16)
    wq = (params["wq"] * scale).astype(jnp.bfloat16)
    bq = (params["bq"] * scale).reshape(1, C).astype(jnp.float32)
    wkv = params["wkv"].astype(jnp.bfloat16)
    bkv = params["bkv"].reshape(1, 2 * C).astype(jnp.float32)
    wp = params["wp"].astype(jnp.bfloat16)
    bp = params["bp"].reshape(1, C).astype(jnp.float32)

    kernel = functools.partial(_mhca_fused_kernel, num_heads=num_heads)

    # Batch-invariant operands (constant index_map): single-buffered so the
    # weight set is only held once in VMEM (no pointless double-buffering).
    def wspec(shape):
        return pl.BlockSpec(shape, lambda b: (0, 0),
                            pipeline_mode=pl.Buffered(1))

    return pl.pallas_call(
        kernel,
        out_shape=jax.ShapeDtypeStruct((B, N, C), out_dtype),
        grid=(B,),
        in_specs=[
            pl.BlockSpec((None, N, C), lambda b: (b, 0, 0)),   # x (squeeze B)
            pl.BlockSpec((None, M, C), lambda b: (b, 0, 0)),   # context
            wspec((C, C)),           # Wq (scale folded in)
            wspec((1, C)),           # bq
            wspec((C, 2 * C)),       # Wkv
            wspec((1, 2 * C)),       # bkv
            wspec((C, C)),           # Wp
            wspec((1, C)),           # bp
        ],
        out_specs=pl.BlockSpec((None, N, C), lambda b: (b, 0, 0)),
        scratch_shapes=[
            pltpu.VMEM((N, C), jnp.bfloat16),        # q
            pltpu.VMEM((M, 2 * C), jnp.bfloat16),    # kv
            pltpu.VMEM((N, C), jnp.float32),         # merged head outputs
        ],
        compiler_params=pltpu.CompilerParams(
            dimension_semantics=("parallel",),       # megacore over batch
            vmem_limit_bytes=48 * 1024 * 1024),
    )(xw, cw, wq, bq, wkv, bkv, wp, bp)


# ---------------------------------------------------------------------------
# Parameters / reference
# ---------------------------------------------------------------------------

def init_params(key, d_model):
    """Deterministic synthetic parameters (shapes match the nn.Linear layers).

    Weights are stored already transposed to (in_features, out_features) so the
    kernel computes x @ W + b (== PyTorch x @ W_pt.T + b).
    """
    ks = jax.random.split(key, 6)
    s = 1.0 / math.sqrt(d_model)
    return {
        "wq":  jax.random.uniform(ks[0], (d_model, d_model), jnp.float32, -s, s),
        "bq":  jax.random.uniform(ks[1], (d_model,),          jnp.float32, -s, s),
        "wkv": jax.random.uniform(ks[2], (d_model, 2 * d_model), jnp.float32, -s, s),
        "bkv": jax.random.uniform(ks[3], (2 * d_model,),         jnp.float32, -s, s),
        "wp":  jax.random.uniform(ks[4], (d_model, d_model), jnp.float32, -s, s),
        "bp":  jax.random.uniform(ks[5], (d_model,),          jnp.float32, -s, s),
    }


def _reference(params, x, context, num_heads):
    """Pure-JAX f32 reference for validation."""
    B, N, C = x.shape
    M = context.shape[1]
    H, D = num_heads, C // num_heads
    q = x @ params["wq"] + params["bq"]
    kv = context @ params["wkv"] + params["bkv"]
    q = q.reshape(B, N, H, D).transpose(0, 2, 1, 3)
    kv = kv.reshape(B, M, 2, H, D).transpose(2, 0, 3, 1, 4)
    k, v = kv[0], kv[1]
    s = jnp.einsum("bhnd,bhmd->bhnm", q, k) / math.sqrt(D)
    p = jax.nn.softmax(s, axis=-1)
    a = jnp.einsum("bhnm,bhmd->bhnd", p, v)
    a = a.transpose(0, 2, 1, 3).reshape(B, N, C)
    return a @ params["wp"] + params["bp"]


if __name__ == "__main__":
    # Small shapes consistent with the forward pass.
    B, N, M = 2, 8, 8           # batch, x seq len, context seq len
    d_model, num_heads = 32, 4  # head_dim = 8

    key = jax.random.PRNGKey(0)
    kx, kc, kp = jax.random.split(key, 3)
    x = jax.random.normal(kx, (B, N, d_model), dtype=jnp.float32)
    context = jax.random.normal(kc, (B, M, d_model), dtype=jnp.float32)
    params = init_params(kp, d_model)

    out = multi_head_cross_attention(params, x, context, num_heads)
    out = jax.block_until_ready(out)

    ref = _reference(params, x, context, num_heads)
    assert out.shape == (B, N, d_model)
    # Tolerance covers bf16 MXU operands (f32 accumulation, f32 softmax stats)
    # vs the pure-f32 reference; real bugs (wrong head split / kv layout) would
    # produce O(0.1 - 1) errors.
    assert jnp.allclose(out, ref, atol=2e-2, rtol=2e-2), "mismatch vs reference"

    print("KERNEL_OK")
</pallas_src>

<mosaic_0001>
module attributes {stable_mosaic.version = 11 : i64} {
  func.func @_mhca_fused_kernel(%arg0: i32, %arg1: memref<1x8x32xbf16, #tpu.memory_space<vmem>>, %arg2: memref<1x8x32xbf16, #tpu.memory_space<vmem>>, %arg3: memref<32x32xbf16, #tpu.memory_space<vmem>>, %arg4: memref<1x32xf32, #tpu.memory_space<vmem>>, %arg5: memref<32x64xbf16, #tpu.memory_space<vmem>>, %arg6: memref<1x64xf32, #tpu.memory_space<vmem>>, %arg7: memref<32x32xbf16, #tpu.memory_space<vmem>>, %arg8: memref<1x32xf32, #tpu.memory_space<vmem>>, %arg9: memref<1x8x32xf32, #tpu.memory_space<vmem>>, %arg10: memref<8x32xbf16, #tpu.memory_space<vmem>>, %arg11: memref<8x64xbf16, #tpu.memory_space<vmem>>, %arg12: memref<8x32xf32, #tpu.memory_space<vmem>>) attributes {dimension_semantics = [#tpu.dimension_semantics<parallel>], iteration_bounds = array<i64: 2>, scalar_prefetch = 0 : i64, scratch_operands = 3 : i64, tpu.core_type = #tpu.core_type<tc>, window_params = [{transform_indices = @transform_0, window_bounds = array<i64: 1, 8, 32>}, {transform_indices = @transform_1, window_bounds = array<i64: 1, 8, 32>}, {pipeline_mode = #tpu.pipeline_mode<synchronous>, transform_indices = @transform_2, window_bounds = array<i64: 32, 32>}, {pipeline_mode = #tpu.pipeline_mode<synchronous>, transform_indices = @transform_3, window_bounds = array<i64: 1, 32>}, {pipeline_mode = #tpu.pipeline_mode<synchronous>, transform_indices = @transform_4, window_bounds = array<i64: 32, 64>}, {pipeline_mode = #tpu.pipeline_mode<synchronous>, transform_indices = @transform_5, window_bounds = array<i64: 1, 64>}, {pipeline_mode = #tpu.pipeline_mode<synchronous>, transform_indices = @transform_6, window_bounds = array<i64: 32, 32>}, {pipeline_mode = #tpu.pipeline_mode<synchronous>, transform_indices = @transform_7, window_bounds = array<i64: 1, 32>}, {transform_indices = @transform_8, window_bounds = array<i64: 1, 8, 32>}]} {
    %c0 = arith.constant 0 : index
    %c0_0 = arith.constant 0 : index
    %c0_1 = arith.constant 0 : index
    %0 = vector.load %arg1[%c0, %c0_0, %c0_1] : memref<1x8x32xbf16, #tpu.memory_space<vmem>>, vector<1x8x32xbf16>
    %1 = vector.shape_cast %0 : vector<1x8x32xbf16> to vector<8x32xbf16>
    %c0_2 = arith.constant 0 : index
    %c0_3 = arith.constant 0 : index
    %2 = vector.load %arg3[%c0_2, %c0_3] : memref<32x32xbf16, #tpu.memory_space<vmem>>, vector<32x32xbf16>
    %cst = arith.constant dense<0.000000e+00> : vector<8x32xf32>
    %3 = tpu.matmul %1, %2, %cst {dimension_numbers = #tpu.dot_dimension_numbers<[1], [0], [0], [1], [0, 0, 1, 1], [], []>} : vector<8x32xbf16>, vector<32x32xbf16>, vector<8x32xf32> -> vector<8x32xf32>
    %c0_4 = arith.constant 0 : index
    %c0_5 = arith.constant 0 : index
    %4 = vector.load %arg4[%c0_4, %c0_5] : memref<1x32xf32, #tpu.memory_space<vmem>>, vector<1x32xf32>
    %5 = vector.broadcast %4 : vector<1x32xf32> to vector<8x32xf32>
    %6 = arith.addf %3, %5 : vector<8x32xf32>
    %7 = arith.truncf %6 : vector<8x32xf32> to vector<8x32xbf16>
    %c0_6 = arith.constant 0 : index
    %c0_7 = arith.constant 0 : index
    %8 = vector.load %arg10[%c0_6, %c0_7] : memref<8x32xbf16, #tpu.memory_space<vmem>>, vector<8x32xbf16>
    tpu.vector_store %arg10[%c0_6, %c0_7], %7 {strides = array<i32>} : memref<8x32xbf16, #tpu.memory_space<vmem>>, vector<8x32xbf16>,
    %c0_8 = arith.constant 0 : index
    %c0_9 = arith.constant 0 : index
    %c0_10 = arith.constant 0 : index
    %9 = vector.load %arg2[%c0_8, %c0_9, %c0_10] : memref<1x8x32xbf16, #tpu.memory_space<vmem>>, vector<1x8x32xbf16>
    %10 = vector.shape_cast %9 : vector<1x8x32xbf16> to vector<8x32xbf16>
    %c0_11 = arith.constant 0 : index
    %c0_12 = arith.constant 0 : index
    %11 = vector.load %arg5[%c0_11, %c0_12] : memref<32x64xbf16, #tpu.memory_space<vmem>>, vector<32x64xbf16>
    %cst_13 = arith.constant dense<0.000000e+00> : vector<8x64xf32>
    %12 = tpu.matmul %10, %11, %cst_13 {dimension_numbers = #tpu.dot_dimension_numbers<[1], [0], [0], [1], [0, 0, 1, 1], [], []>} : vector<8x32xbf16>, vector<32x64xbf16>, vector<8x64xf32> -> vector<8x64xf32>
    %c0_14 = arith.constant 0 : index
    %c0_15 = arith.constant 0 : index
    %13 = vector.load %arg6[%c0_14, %c0_15] : memref<1x64xf32, #tpu.memory_space<vmem>>, vector<1x64xf32>
    %14 = vector.broadcast %13 : vector<1x64xf32> to vector<8x64xf32>
    %15 = arith.addf %12, %14 : vector<8x64xf32>
    %16 = arith.truncf %15 : vector<8x64xf32> to vector<8x64xbf16>
    %c0_16 = arith.constant 0 : index
    %c0_17 = arith.constant 0 : index
    %17 = vector.load %arg11[%c0_16, %c0_17] : memref<8x64xbf16, #tpu.memory_space<vmem>>, vector<8x64xbf16>
    tpu.vector_store %arg11[%c0_16, %c0_17], %16 {strides = array<i32>} : memref<8x64xbf16, #tpu.memory_space<vmem>>, vector<8x64xbf16>,
    %c0_18 = arith.constant 0 : index
    %c0_19 = arith.constant 0 : index
    %18 = vector.load %arg10[%c0_18, %c0_19] : memref<8x32xbf16, #tpu.memory_space<vmem>>, vector<8x8xbf16>
    %c0_20 = arith.constant 0 : index
    %c0_21 = arith.constant 0 : index
    %19 = vector.load %arg11[%c0_20, %c0_21] : memref<8x64xbf16, #tpu.memory_space<vmem>>, vector<8x8xbf16>
    %c0_22 = arith.constant 0 : index
    %c32 = arith.constant 32 : index
    %20 = vector.load %arg11[%c0_22, %c32] : memref<8x64xbf16, #tpu.memory_space<vmem>>, vector<8x8xbf16>
    %cst_23 = arith.constant dense<0.000000e+00> : vector<8x8xf32>
    %21 = tpu.matmul %18, %19, %cst_23 {dimension_numbers = #tpu.dot_dimension_numbers<[1], [1], [0], [0], [0, 0, 1, 0], [], []>} : vector<8x8xbf16>, vector<8x8xbf16>, vector<8x8xf32> -> vector<8x8xf32>
    %cst_24 = arith.constant dense<0xFF800000> : vector<8xf32>
    %22 = vector.multi_reduction <maximumf>, %21, %cst_24 [1] : vector<8x8xf32> to vector<8xf32>
    %23 = vector.shape_cast %22 : vector<8xf32> to vector<8x1xf32>
    %24 = vector.broadcast %23 : vector<8x1xf32> to vector<8x8xf32>
    %25 = arith.subf %21, %24 : vector<8x8xf32>
    %26 = math.exp %25 : vector<8x8xf32>
    %cst_25 = arith.constant dense<0.000000e+00> : vector<8xf32>
    %27 = vector.multi_reduction <add>, %26, %cst_25 [1] : vector<8x8xf32> to vector<8xf32>
    %28 = vector.shape_cast %27 : vector<8xf32> to vector<8x1xf32>
    %29 = arith.truncf %26 : vector<8x8xf32> to vector<8x8xbf16>
    %cst_26 = arith.constant dense<0.000000e+00> : vector<8x8xf32>
    %30 = tpu.matmul %29, %20, %cst_26 {dimension_numbers = #tpu.dot_dimension_numbers<[1], [0], [0], [1], [0, 0, 1, 1], [], []>} : vector<8x8xbf16>, vector<8x8xbf16>, vector<8x8xf32> -> vector<8x8xf32>
    %31 = tpu.reciprocal %28 : vector<8x1xf32> -> vector<8x1xf32>
    %32 = vector.broadcast %31 : vector<8x1xf32> to vector<8x8xf32>
    %33 = arith.mulf %30, %32 : vector<8x8xf32>
    %c0_27 = arith.constant 0 : index
    %c0_28 = arith.constant 0 : index
    %34 = vector.load %arg12[%c0_27, %c0_28] : memref<8x32xf32, #tpu.memory_space<vmem>>, vector<8x8xf32>
    tpu.vector_store %arg12[%c0_27, %c0_28], %33 {strides = array<i32>} : memref<8x32xf32, #tpu.memory_space<vmem>>, vector<8x8xf32>,
    %c0_29 = arith.constant 0 : index
    %c8 = arith.constant 8 : index
    %35 = vector.load %arg10[%c0_29, %c8] : memref<8x32xbf16, #tpu.memory_space<vmem>>, vector<8x8xbf16>
    %c0_30 = arith.constant 0 : index
    %c8_31 = arith.constant 8 : index
    %36 = vector.load %arg11[%c0_30, %c8_31] : memref<8x64xbf16, #tpu.memory_space<vmem>>, vector<8x8xbf16>
    %c0_32 = arith.constant 0 : index
    %c40 = arith.constant 40 : index
    %37 = vector.load %arg11[%c0_32, %c40] : memref<8x64xbf16, #tpu.memory_space<vmem>>, vector<8x8xbf16>
    %cst_33 = arith.constant dense<0.000000e+00> : vector<8x8xf32>
    %38 = tpu.matmul %35, %36, %cst_33 {dimension_numbers = #tpu.dot_dimension_numbers<[1], [1], [0], [0], [0, 0, 1, 0], [], []>} : vector<8x8xbf16>, vector<8x8xbf16>, vector<8x8xf32> -> vector<8x8xf32>
    %cst_34 = arith.constant dense<0xFF800000> : vector<8xf32>
    %39 = vector.multi_reduction <maximumf>, %38, %cst_34 [1] : vector<8x8xf32> to vector<8xf32>
    %40 = vector.shape_cast %39 : vector<8xf32> to vector<8x1xf32>
    %41 = vector.broadcast %40 : vector<8x1xf32> to vector<8x8xf32>
    %42 = arith.subf %38, %41 : vector<8x8xf32>
    %43 = math.exp %42 : vector<8x8xf32>
    %cst_35 = arith.constant dense<0.000000e+00> : vector<8xf32>
    %44 = vector.multi_reduction <add>, %43, %cst_35 [1] : vector<8x8xf32> to vector<8xf32>
    %45 = vector.shape_cast %44 : vector<8xf32> to vector<8x1xf32>
    %46 = arith.truncf %43 : vector<8x8xf32> to vector<8x8xbf16>
    %cst_36 = arith.constant dense<0.000000e+00> : vector<8x8xf32>
    %47 = tpu.matmul %46, %37, %cst_36 {dimension_numbers = #tpu.dot_dimension_numbers<[1], [0], [0], [1], [0, 0, 1, 1], [], []>} : vector<8x8xbf16>, vector<8x8xbf16>, vector<8x8xf32> -> vector<8x8xf32>
    %48 = tpu.reciprocal %45 : vector<8x1xf32> -> vector<8x1xf32>
    %49 = vector.broadcast %48 : vector<8x1xf32> to vector<8x8xf32>
    %50 = arith.mulf %47, %49 : vector<8x8xf32>
    %c0_37 = arith.constant 0 : index
    %c8_38 = arith.constant 8 : index
    %51 = vector.load %arg12[%c0_37, %c8_38] : memref<8x32xf32, #tpu.memory_space<vmem>>, vector<8x8xf32>
    tpu.vector_store %arg12[%c0_37, %c8_38], %50 {strides = array<i32>} : memref<8x32xf32, #tpu.memory_space<vmem>>, vector<8x8xf32>,
    %c0_39 = arith.constant 0 : index
    %c16 = arith.constant 16 : index
    %52 = vector.load %arg10[%c0_39, %c16] : memref<8x32xbf16, #tpu.memory_space<vmem>>, vector<8x8xbf16>
    %c0_40 = arith.constant 0 : index
    %c16_41 = arith.constant 16 : index
    %53 = vector.load %arg11[%c0_40, %c16_41] : memref<8x64xbf16, #tpu.memory_space<vmem>>, vector<8x8xbf16>
    %c0_42 = arith.constant 0 : index
    %c48 = arith.constant 48 : index
    %54 = vector.load %arg11[%c0_42, %c48] : memref<8x64xbf16, #tpu.memory_space<vmem>>, vector<8x8xbf16>
    %cst_43 = arith.constant dense<0.000000e+00> : vector<8x8xf32>
    %55 = tpu.matmul %52, %53, %cst_43 {dimension_numbers = #tpu.dot_dimension_numbers<[1], [1], [0], [0], [0, 0, 1, 0], [], []>} : vector<8x8xbf16>, vector<8x8xbf16>, vector<8x8xf32> -> vector<8x8xf32>
    %cst_44 = arith.constant dense<0xFF800000> : vector<8xf32>
    %56 = vector.multi_reduction <maximumf>, %55, %cst_44 [1] : vector<8x8xf32> to vector<8xf32>
    %57 = vector.shape_cast %56 : vector<8xf32> to vector<8x1xf32>
    %58 = vector.broadcast %57 : vector<8x1xf32> to vector<8x8xf32>
    %59 = arith.subf %55, %58 : vector<8x8xf32>
    %60 = math.exp %59 : vector<8x8xf32>
    %cst_45 = arith.constant dense<0.000000e+00> : vector<8xf32>
    %61 = vector.multi_reduction <add>, %60, %cst_45 [1] : vector<8x8xf32> to vector<8xf32>
    %62 = vector.shape_cast %61 : vector<8xf32> to vector<8x1xf32>
    %63 = arith.truncf %60 : vector<8x8xf32> to vector<8x8xbf16>
    %cst_46 = arith.constant dense<0.000000e+00> : vector<8x8xf32>
    %64 = tpu.matmul %63, %54, %cst_46 {dimension_numbers = #tpu.dot_dimension_numbers<[1], [0], [0], [1], [0, 0, 1, 1], [], []>} : vector<8x8xbf16>, vector<8x8xbf16>, vector<8x8xf32> -> vector<8x8xf32>
    %65 = tpu.reciprocal %62 : vector<8x1xf32> -> vector<8x1xf32>
    %66 = vector.broadcast %65 : vector<8x1xf32> to vector<8x8xf32>
    %67 = arith.mulf %64, %66 : vector<8x8xf32>
    %c0_47 = arith.constant 0 : index
    %c16_48 = arith.constant 16 : index
    %68 = vector.load %arg12[%c0_47, %c16_48] : memref<8x32xf32, #tpu.memory_space<vmem>>, vector<8x8xf32>
    tpu.vector_store %arg12[%c0_47, %c16_48], %67 {strides = array<i32>} : memref<8x32xf32, #tpu.memory_space<vmem>>, vector<8x8xf32>,
    %c0_49 = arith.constant 0 : index
    %c24 = arith.constant 24 : index
    %69 = vector.load %arg10[%c0_49, %c24] : memref<8x32xbf16, #tpu.memory_space<vmem>>, vector<8x8xbf16>
    %c0_50 = arith.constant 0 : index
    %c24_51 = arith.constant 24 : index
    %70 = vector.load %arg11[%c0_50, %c24_51] : memref<8x64xbf16, #tpu.memory_space<vmem>>, vector<8x8xbf16>
    %c0_52 = arith.constant 0 : index
    %c56 = arith.constant 56 : index
    %71 = vector.load %arg11[%c0_52, %c56] : memref<8x64xbf16, #tpu.memory_space<vmem>>, vector<8x8xbf16>
    %cst_53 = arith.constant dense<0.000000e+00> : vector<8x8xf32>
    %72 = tpu.matmul %69, %70, %cst_53 {dimension_numbers = #tpu.dot_dimension_numbers<[1], [1], [0], [0], [0, 0, 1, 0], [], []>} : vector<8x8xbf16>, vector<8x8xbf16>, vector<8x8xf32> -> vector<8x8xf32>
    %cst_54 = arith.constant dense<0xFF800000> : vector<8xf32>
    %73 = vector.multi_reduction <maximumf>, %72, %cst_54 [1] : vector<8x8xf32> to vector<8xf32>
    %74 = vector.shape_cast %73 : vector<8xf32> to vector<8x1xf32>
    %75 = vector.broadcast %74 : vector<8x1xf32> to vector<8x8xf32>
    %76 = arith.subf %72, %75 : vector<8x8xf32>
    %77 = math.exp %76 : vector<8x8xf32>
    %cst_55 = arith.constant dense<0.000000e+00> : vector<8xf32>
    %78 = vector.multi_reduction <add>, %77, %cst_55 [1] : vector<8x8xf32> to vector<8xf32>
    %79 = vector.shape_cast %78 : vector<8xf32> to vector<8x1xf32>
    %80 = arith.truncf %77 : vector<8x8xf32> to vector<8x8xbf16>
    %cst_56 = arith.constant dense<0.000000e+00> : vector<8x8xf32>
    %81 = tpu.matmul %80, %71, %cst_56 {dimension_numbers = #tpu.dot_dimension_numbers<[1], [0], [0], [1], [0, 0, 1, 1], [], []>} : vector<8x8xbf16>, vector<8x8xbf16>, vector<8x8xf32> -> vector<8x8xf32>
    %82 = tpu.reciprocal %79 : vector<8x1xf32> -> vector<8x1xf32>
    %83 = vector.broadcast %82 : vector<8x1xf32> to vector<8x8xf32>
    %84 = arith.mulf %81, %83 : vector<8x8xf32>
    %c0_57 = arith.constant 0 : index
    %c24_58 = arith.constant 24 : index
    %85 = vector.load %arg12[%c0_57, %c24_58] : memref<8x32xf32, #tpu.memory_space<vmem>>, vector<8x8xf32>
    tpu.vector_store %arg12[%c0_57, %c24_58], %84 {strides = array<i32>} : memref<8x32xf32, #tpu.memory_space<vmem>>, vector<8x8xf32>,
    %c0_59 = arith.constant 0 : index
    %c0_60 = arith.constant 0 : index
    %86 = vector.load %arg12[%c0_59, %c0_60] : memref<8x32xf32, #tpu.memory_space<vmem>>, vector<8x32xf32>
    %87 = arith.truncf %86 : vector<8x32xf32> to vector<8x32xbf16>
    %c0_61 = arith.constant 0 : index
    %c0_62 = arith.constant 0 : index
    %88 = vector.load %arg7[%c0_61, %c0_62] : memref<32x32xbf16, #tpu.memory_space<vmem>>, vector<32x32xbf16>
    %cst_63 = arith.constant dense<0.000000e+00> : vector<8x32xf32>
    %89 = tpu.matmul %87, %88, %cst_63 {dimension_numbers = #tpu.dot_dimension_numbers<[1], [0], [0], [1], [0, 0, 1, 1], [], []>} : vector<8x32xbf16>, vector<32x32xbf16>, vector<8x32xf32> -> vector<8x32xf32>
    %c0_64 = arith.constant 0 : index
    %c0_65 = arith.constant 0 : index
    %90 = vector.load %arg8[%c0_64, %c0_65] : memref<1x32xf32, #tpu.memory_space<vmem>>, vector<1x32xf32>
    %91 = vector.broadcast %90 : vector<1x32xf32> to vector<8x32xf32>
    %92 = arith.addf %89, %91 : vector<8x32xf32>
    %c0_66 = arith.constant 0 : index
    %c0_67 = arith.constant 0 : index
    %c0_68 = arith.constant 0 : index
    %93 = vector.load %arg9[%c0_66, %c0_67, %c0_68] : memref<1x8x32xf32, #tpu.memory_space<vmem>>, vector<1x8x32xf32>
    %94 = vector.shape_cast %93 : vector<1x8x32xf32> to vector<8x32xf32>
    %95 = vector.shape_cast %92 : vector<8x32xf32> to vector<1x8x32xf32>
    tpu.vector_store %arg9[%c0_66, %c0_67, %c0_68], %95 {strides = array<i32>} : memref<1x8x32xf32, #tpu.memory_space<vmem>>, vector<1x8x32xf32>,
    return
  }
  func.func @transform_0(%arg0: i32) -> (i32, i32, i32) {
    %c0_i32 = arith.constant 0 : i32
    %c0_i32_0 = arith.constant 0 : i32
    %c0_i32_1 = arith.constant 0 : i32
    return %arg0, %c0_i32, %c0_i32_0 : i32, i32, i32
  }
  func.func @transform_1(%arg0: i32) -> (i32, i32, i32) {
    %c0_i32 = arith.constant 0 : i32
    %c0_i32_0 = arith.constant 0 : i32
    %c0_i32_1 = arith.constant 0 : i32
    return %arg0, %c0_i32, %c0_i32_0 : i32, i32, i32
  }
  func.func @transform_2(%arg0: i32) -> (i32, i32) {
    %c0_i32 = arith.constant 0 : i32
    %c0_i32_0 = arith.constant 0 : i32
    %c0_i32_1 = arith.constant 0 : i32
    return %c0_i32, %c0_i32_0 : i32, i32
  }
  func.func @transform_3(%arg0: i32) -> (i32, i32) {
    %c0_i32 = arith.constant 0 : i32
    %c0_i32_0 = arith.constant 0 : i32
    %c0_i32_1 = arith.constant 0 : i32
    return %c0_i32, %c0_i32_0 : i32, i32
  }
  func.func @transform_4(%arg0: i32) -> (i32, i32) {
    %c0_i32 = arith.constant 0 : i32
    %c0_i32_0 = arith.constant 0 : i32
    %c0_i32_1 = arith.constant 0 : i32
    return %c0_i32, %c0_i32_0 : i32, i32
  }
  func.func @transform_5(%arg0: i32) -> (i32, i32) {
    %c0_i32 = arith.constant 0 : i32
    %c0_i32_0 = arith.constant 0 : i32
    %c0_i32_1 = arith.constant 0 : i32
    return %c0_i32, %c0_i32_0 : i32, i32
  }
  func.func @transform_6(%arg0: i32) -> (i32, i32) {
    %c0_i32 = arith.constant 0 : i32
    %c0_i32_0 = arith.constant 0 : i32
    %c0_i32_1 = arith.constant 0 : i32
    return %c0_i32, %c0_i32_0 : i32, i32
  }
  func.func @transform_7(%arg0: i32) -> (i32, i32) {
    %c0_i32 = arith.constant 0 : i32
    %c0_i32_0 = arith.constant 0 : i32
    %c0_i32_1 = arith.constant 0 : i32
    return %c0_i32, %c0_i32_0 : i32, i32
  }
  func.func @transform_8(%arg0: i32) -> (i32, i32, i32) {
    %c0_i32 = arith.constant 0 : i32
    %c0_i32_0 = arith.constant 0 : i32
    %c0_i32_1 = arith.constant 0 : i32
    return %arg0, %c0_i32, %c0_i32_0 : i32, i32, i32
  }
}

</mosaic_0001>

<bundles_post_ra>
// kernel: tpu_custom_call.1
= control target key start
LH: loop header
LB: loop body
LE: loop exit
PB: predicated region body
PF: predicated region fallthrough
CT: control target
= control target key end

     0   :  { %s2086_s0 = inlined_call_operand.hbm [shape: bf16[2,8,32], index: 0, kind: input, shape index: {}]   ;;  %s2087_s1 = inlined_call_operand.hbm [shape: bf16[2,8,32], index: 1, kind: input, shape index: {}]   ;;  %s2088_s2 = inlined_call_operand.hbm [shape: bf16[32,32], index: 2, kind: input, shape index: {}]   ;;  %s2089_s3 = inlined_call_operand.vmem [shape: f32[1,32], index: 3, kind: input, shape index: {}]   ;;  %s2090_s4 = inlined_call_operand.hbm [shape: bf16[32,64], index: 4, kind: input, shape index: {}]   ;;  %s2091_s5 = inlined_call_operand.vmem [shape: f32[1,64], index: 5, kind: input, shape index: {}]   ;;  %s2092_s6 = inlined_call_operand.vmem [shape: bf16[32,32], index: 6, kind: input, shape index: {}]   ;;  %s2093_s7 = inlined_call_operand.vmem [shape: f32[1,32], index: 7, kind: input, shape index: {}]   ;;  %s2094_s8 = inlined_call_operand.hbm [shape: f32[2,8,32], index: 8, kind: output, shape index: {}]  }
   0x1   :  { %2102 = sst [smem:[#allocation22_spill]] %s2088_s2 }
   0x2   :  { %2103 = sst [smem:[#allocation23_spill]] %s2090_s4 }
   0x3   :  { %13 = vsyncpa [#allocation6], 0 }
   0x4   :  { %15 = vsyncpa [#allocation6 + $0x1], 0 }
   0x5   :  { %16 = vsyncpa [#allocation9], 0 }
   0x6   :  { %18 = vsyncpa [#allocation9 + $0x1], 0 }
   0x7   :  { %19 = vsyncpa [#allocation12], 0 }
   0x8   :  { %20 = vsyncpa [#allocation7], 0 }
   0x9   :  { %22 = vsyncpa [#allocation7 + $0x1], 0  ;;  %s1728_s27 = smov 0   ;;  %s1730_s28 = smov 0  }
   0xa   :  { %s1732_s29 = smov 0   ;;  %s1734_s30 = smov 0  }
   0xb LB: > { %2104 = sst [smem:[#allocation19_spill]] %s1658_s29  ;;  %s1749_s9 = sadd.s32 4294967295, %s1662_s30   ;;  %s1662_s30 = sphi %s1734_s30, %s2125_s30   ;;  %s1658_s29 = sphi %s1732_s29, %s2127_s29   ;;  %s1654_s28 = sphi %s1730_s28, %s2129_s28   ;;  %s1650_s27 = sphi %s1728_s27, %s2128_s27  }
   0xc   : > { %s1210_s10 = sadd.s32 4294967294, %s1662_s30   ;;  %p48_p0 = scmp.ne.s32.totalorder %s1654_s28, %s1650_s27 }
   0xd   : > { %p2095_p1 = scmp.eq.s32.totalorder %s1749_s9, 0  ;;  %p230_p3 = scmp.eq.s32.totalorder %s1210_s10, 1 }
   0xe   : > { %p1211_p5 = scmp.ge.s32.totalorder %s1662_s30, 1  ;;  %p237_p7 = scmp.lt.s32.totalorder %s1662_s30, 3 }
   0xf   : > { %p1758_p4 = por %p2095_p1, %p48_p0  ;;  %p1763_p6 = por %p230_p3, %p48_p0 }
  0x10   : > { %p1768_p8 = pnand %p1211_p5, %p237_p7  ;;  %s1664_s14 = smov [#allocation10]  }
  0x11   : > { %s2105_s11 = scalar_select %p1758_p4, 1, 0 }
  0x12   : > { %s2106_s12 = scalar_select %p1763_p6, 1, 0 }
  0x13   : > { %s2107_s13 = scalar_select %p1768_p8, 1, 0 }
  0x14   : > { %s249_s15 = sshll.u32 %s1664_s14, 4  ;;  %p1367_p9 = pneg %p1768_p8  ;;  %s1772_s15 = int_to_ptr.vmem [resolvable:$true] %s249_s15 }
  0x15   : > { %s1665_s17 = smov [#allocation11]   ;;  %s2109_s2 = sld [smem:[#allocation22_spill]] }
  0x16   : > { %p1779_p11 = pnand %p1367_p9, %p2095_p1  ;;  %s265_s18 = sshll.u32 %s1665_s17, 4  ;;  %s1783_s18 = int_to_ptr.vmem [resolvable:$true] %s265_s18 }
  0x18   : > { %p1470_p13 = pneg %p1779_p11 }
  0x1b   : > { %s1468_s21 = scalar_lea.hbm %s2109_s2, 256 }
  0x1c   : > { %p1469_p12 = scmp.ne.s32.totalorder %s2109_s2, %s1468_s21  ;;  %p1475_p5 = scmp.lt.u32.totalorder %s1468_s21, %s2109_s2 }
  0x1e   : > { %p1471_p0 = pnand %p1470_p13, %p1469_p12 }
  0x20   : > { %p1472_p3 = pneg %p1471_p0 }
  0x22   : > { %p1477_p7 = pnand %p1475_p5, %p1472_p3 }
  0x24   : > { %1480 = shalt.err (!%p1477_p7)
}
  0x25   : > { %s1481_s26 = scalar_lea.vmem %s1772_s15, 256  ;;  %p1489_p2 = scmp.lt.s32.totalorder %s1772_s15, %s1772_s15 }
  0x26   : > { %p1482_p9 = scmp.ne.s32.totalorder %s1772_s15, %s1481_s26  ;;  %p1490_p12 = scmp.lt.s32.totalorder %s1481_s26, %s1481_s26 }
  0x28   : > { %p1484_p10 = pnand %p1482_p9, %p1470_p13  ;;  %p1491_p0 = por %p1490_p12, %p1489_p2 }
  0x2a   : > { %p1485_p1 = pneg %p1484_p10 }
  0x2c   : > { %p1492_p6 = pnand %p1491_p0, %p1485_p1 }
  0x2e   : > { %1495 = shalt.err (!%p1492_p6)
}
  0x2f   : > { %s1666_s10 = smov 64   ;;  %s1667_s14 = smov 4  }
  0x30   : > { %1370 = dma.hbm_to_vmem [thread:$0]  (!%p1779_p11), %s2109_s2, 256, %s1772_s15, [#allocation9], %s1666_s10, %s1666_s10, %s1667_s14  }
  0x31   : > { %s2110_s4 = sld [smem:[#allocation23_spill]] }
  0x37   : > { %s1496_s22 = scalar_lea.hbm %s2110_s4, 256 }
  0x38   : > { %p1497_p2 = scmp.ne.s32.totalorder %s2110_s4, %s1496_s22  ;;  %p1503_p10 = scmp.lt.u32.totalorder %s1496_s22, %s2110_s4 }
  0x3a   : > { %p1499_p1 = pnand %p1497_p2, %p1470_p13 }
  0x3c   : > { %p1500_p6 = pneg %p1499_p1 }
  0x3e   : > { %p1505_p3 = pnand %p1503_p10, %p1500_p6 }
  0x40   : > { %1508 = shalt.err (!%p1505_p3)
}
  0x41   : > { %s1509_s15 = scalar_lea.vmem %s1783_s18, 256  ;;  %p1517_p12 = scmp.lt.s32.totalorder %s1783_s18, %s1783_s18 }
  0x42   : > { %p1510_p5 = scmp.ne.s32.totalorder %s1783_s18, %s1509_s15  ;;  %p1518_p0 = scmp.lt.s32.totalorder %s1509_s15, %s1509_s15 }
  0x44   : > { %p1512_p7 = pnand %p1510_p5, %p1470_p13  ;;  %p1519_p2 = por %p1518_p0, %p1517_p12 }
  0x46   : > { %p1513_p9 = pneg %p1512_p7 }
  0x48   : > { %p1520_p1 = pnand %p1519_p2, %p1513_p9 }
  0x4a   : > { %1523 = shalt.err (!%p1520_p1)
}
  0x4b   : > { %1373 = dma.hbm_to_vmem [thread:$0]  (!%p1779_p11), %s2110_s4, 256, %s1783_s18, [#allocation12], %s1666_s10, %s1666_s10, %s1667_s14  }
  0x4c   : > { %s1838_s20 = sadd.s32 1, %s1662_s30   ;;  %s35_s16 = sadd.s32 1, %s1658_s29 }
  0x4d   : > { %2111 = sst [smem:[#allocation20_spill]] %s1838_s20  ;;  %s32_s21 = ssub.s32 %s1662_s30, %s1838_s20 }
  0x4e   : > { %p42_p13 = scmp.ne.s32.totalorder %s1658_s29, %s1654_s28  ;;  %p33_p6 = scmp.eq.s32.totalorder %s32_s21, 0 }
  0x4f   : > { %p43_p10 = scmp.eq.s32.totalorder %s1662_s30, 0  ;;  %p2112_p3 = scmp.eq.s32.totalorder %s1749_s9, 1 }
  0x50   : > { %p1387_p7 = scmp.lt.s32.totalorder %s1662_s30, 2  ;;  %s288_s24 = sand.u32 1, %s1658_s29  }
  0x51   : > { %p1848_p5 = por %p2112_p3, %p42_p13  ;;  %p44_p9 = por %p43_p10, %p42_p13 }
  0x52   : > { %s1854_s23 = scalar_select %p33_p6, %s1658_s29, %s35_s16  }
  0x53   : > { %s2113_s22 = scalar_select %p1848_p5, 1, 0 }
  0x54   : > { %2114 = sst [smem:[#allocation21_spill]] %s1854_s23  ;;  %s1857_s18 = sshll.u32 %s288_s24, 2 }
  0x55   : > { %s1216_s10 = sshll.u32 %s1662_s30, 6  ;;  %s292_s15 = scalar_lea.vmem [#allocation5], %s1857_s18 }
  0x56   : > { %s1863_s26 = scalar_lea.hbm %s2086_s0, %s1216_s10  ;;  %s299_s17 = sshll.u32 %s292_s15, 4  ;;  %s1866_s17 = int_to_ptr.vmem [resolvable:$true] %s299_s17 }
  0x57   : > { %p1868_p11 = pnand %p1387_p7, %p44_p9  ;;  %s1875_s14 = scalar_lea.hbm %s2087_s1, %s1216_s10 }
  0x58   : > { %s306_s25 = sand.u32 1, %s1662_s30   ;;  %s289_s2 = scalar_lea.sflag [#allocation6], %s288_s24 }
  0x59   : > { %s1524_s4 = scalar_lea.hbm %s1863_s26, 64  ;;  %p1526_p0 = pneg %p1868_p11 }
  0x5a   : > { %p1525_p12 = scmp.ne.s32.totalorder %s1863_s26, %s1524_s4  ;;  %s1529_s29 = scalar_lea.hbm %s2086_s0, 128 }
  0x5b   : > { %p1530_p13 = scmp.lt.u32.totalorder %s1863_s26, %s2086_s0  ;;  %p1531_p6 = scmp.lt.u32.totalorder %s1529_s29, %s1524_s4 }
  0x5c   : > { %p1527_p2 = pnand %p1526_p0, %p1525_p12  ;;  %p1533_p3 = scmp.lt.u32.totalorder %s1524_s4, %s1863_s26 }
  0x5d   : > { %p1532_p10 = por %p1531_p6, %p1530_p13 }
  0x5e   : > { %p1528_p1 = pneg %p1527_p2 }
  0x5f   : > { %p1534_p7 = por %p1533_p3, %p1532_p10 }
  0x61   : > { %p1535_p9 = pnand %p1534_p7, %p1528_p1 }
  0x63   : > { %1538 = shalt.err (!%p1535_p9)
}
  0x64   : > { %s1539_s24 = scalar_lea.vmem %s1866_s17, 64  ;;  %s1668_s23 = smov [#allocation5]  }
  0x65   : > { %p1540_p12 = scmp.ne.s32.totalorder %s1866_s17, %s1539_s24  ;;  %s1544_s10 = sshll.u32 %s1668_s23, 4  ;;  %s1545_s10 = int_to_ptr.vmem [resolvable:$false] %s1544_s10 }
  0x66   : > { %s1546_s20 = scalar_lea.vmem %s1545_s10, 128  ;;  %p1547_p4 = scmp.lt.s32.totalorder %s1866_s17, %s1545_s10 }
  0x67   : > { %p1542_p2 = pnand %p1540_p12, %p1526_p0  ;;  %p1548_p13 = scmp.lt.s32.totalorder %s1546_s20, %s1539_s24 }
  0x69   : > { %p1543_p5 = pneg %p1542_p2  ;;  %p1549_p6 = por %p1548_p13, %p1547_p4 }
  0x6b   : > { %p1550_p10 = pnand %p1549_p6, %p1543_p5 }
  0x6d   : > { %1553 = shalt.err (!%p1550_p10)
}
  0x6e   : > { %1377 = dma.hbm_to_vmem [thread:$0]  (!%p1868_p11), %s1863_s26, 64, %s1866_s17, %s289_s2  }
  0x6f   : > { %s310_s4 = scalar_lea.vmem [#allocation8], %s1857_s18  ;;  %s307_s21 = scalar_lea.sflag [#allocation9], %s306_s25 }
  0x70   : > { %s317_s29 = sshll.u32 %s310_s4, 4  ;;  %s1554_s15 = scalar_lea.hbm %s1875_s14, 64  ;;  %s318_s29 = int_to_ptr.vmem [resolvable:$true] %s317_s29 }
  0x71   : > { %p1555_p4 = scmp.ne.s32.totalorder %s1875_s14, %s1554_s15  ;;  %s1559_s23 = scalar_lea.hbm %s2087_s1, 128 }
  0x72   : > { %p1560_p3 = scmp.lt.u32.totalorder %s1875_s14, %s2087_s1  ;;  %p1561_p7 = scmp.lt.u32.totalorder %s1559_s23, %s1554_s15 }
  0x73   : > { %p1557_p5 = pnand %p1555_p4, %p1526_p0  ;;  %p1563_p12 = scmp.lt.u32.totalorder %s1554_s15, %s1875_s14 }
  0x74   : > { %p1562_p9 = por %p1561_p7, %p1560_p3 }
  0x75   : > { %p1558_p1 = pneg %p1557_p5 }
  0x76   : > { %p1564_p2 = por %p1563_p12, %p1562_p9 }
  0x78   : > { %p1565_p13 = pnand %p1564_p2, %p1558_p1 }
  0x7a   : > { %1568 = shalt.err (!%p1565_p13)
}
  0x7b   : > { %s1569_s2 = scalar_lea.vmem %s318_s29, 64  ;;  %s1669_s18 = smov [#allocation8]  }
  0x7c   : > { %p1570_p6 = scmp.ne.s32.totalorder %s318_s29, %s1569_s2  ;;  %s1574_s26 = sshll.u32 %s1669_s18, 4  ;;  %s1575_s26 = int_to_ptr.vmem [resolvable:$false] %s1574_s26 }
  0x7d   : > { %s1576_s17 = scalar_lea.vmem %s1575_s26, 128  ;;  %p1577_p5 = scmp.lt.s32.totalorder %s318_s29, %s1575_s26 }
  0x7e   : > { %p1572_p10 = pnand %p1570_p6, %p1526_p0  ;;  %p1578_p8 = scmp.lt.s32.totalorder %s1576_s17, %s1569_s2 }
  0x80   : > { %p1573_p4 = pneg %p1572_p10  ;;  %p1579_p3 = por %p1578_p8, %p1577_p5 }
  0x82   : > { %p1580_p7 = pnand %p1579_p3, %p1573_p4 }
  0x84   : > { %1583 = shalt.err (!%p1580_p7)
}
  0x85   : > { %1380 = dma.hbm_to_vmem [thread:$0]  (!%p1868_p11), %s1875_s14, 64, %s318_s29, %s307_s21  }
  0x86   : > { %p2116_p1 = scmp.ne.s32.totalorder %s2107_s13, 0 }
  0x87   : > { %s1928_s25 = sand.u32 (!%p2116_p1), 1, %s1654_s28   ;;  %p2117_p0 = scmp.ne.s32.totalorder (!%p2116_p1), %s2105_s11, 0 }
  0x88   : > { %326 = sbr.rel (%p2116_p1) target bundleno = 1474 (0x5c2), region = 52  ;;  %s1220_s4 = sshll.u32 (!%p2116_p1), %s1928_s25, 2 }
  0x89   : > { %s329_s15 = scalar_lea.sflag (!%p2116_p1), [#allocation6], %s1928_s25  ;;  %s332_s16 = scalar_lea.vmem (!%p2116_p1), [#allocation5], %s1220_s4 }
  0x8f   : > { %1629 = dma.done.wait (%p2117_p0), %s329_s15, 64  }
  0x90   : > { %1631 = vsyncadd (%p2117_p0), %s329_s15, 4294967232  ;;  %s337_s19 = sand.u32 1, %s1749_s9   ;;  %s341_s13 = scalar_lea.vmem [#allocation8], %s1220_s4 }
  0x91   : > { %s338_s14 = scalar_lea.sflag [#allocation9], %s337_s19 }
  0x92   : > { %1633 = dma.done.wait (%p2117_p0), %s338_s14, 64  }
  0x93   : > { %1635 = vsyncadd (%p2117_p0), %s338_s14, 4294967232  ;;  %p2118_p8 = scmp.eq.s32.totalorder %s1749_s9, 0 }
  0x95   : > { %1637 = dma.done.wait (%p2118_p8), [#allocation9], 256   ;;  %p2119_p11 = pmov %p2118_p8 }
  0x96   : > { %p2120_p9 = pmov %p2118_p8 }
  0x97   : > { %1639 = vsyncadd (%p2119_p11), [#allocation9], 4294967040 }
  0x98   : > { %1641 = dma.done.wait (%p2120_p9), [#allocation12], 256   ;;  %p2121_p12 = pmov %p2118_p8 }
  0x99   : > { %v1670_v0 = vmov 0.0   ;;  %vm1671_vm0 = vmmov 0   ;;  %v1439_v1 = vld [vmem:[#allocation11] sm:$0xff]   ;;  %v1440_v2 = vld [vmem:[#allocation10] sm:$0xff]   ;;  %v1441_v3 = vld [vmem:[#allocation11 + $0x8] sm:$0xff]   ;;  %vm412_vm1 = vcmask 261120  }
  0x9a   : > { %1643 = vsyncadd (%p2121_p12), [#allocation12], 4294967040  ;;  %1289 = vmatprep.subr.bf16.mxu1 %v1670_v0  ;;  %1281 = vmatprep.subr.bf16.mxu0 %v1670_v0  ;;  %v1442_v4 = vld [vmem:[#allocation10 + $0x8] sm:$0xff]   ;;  %v459_v5 = vld [vmem:[%s341_s13] sm:$0xf]  ;;  %vm527_vm2 = vcmask 519168  }
  0x9b   : > { %1293 = vmatprep.mubr.msk.bf16.mxu1 %vm1671_vm0, %v1670_v0  ;;  %1285 = vmatprep.mubr.msk.bf16.mxu0 %vm1671_vm0, %v1670_v0  ;;  %v388_v6 = vld [vmem:[%s332_s16] sm:$0xf]  ;;  %vm457_vm3 = vcmask 257024   ;;  %vm531_vm4 = vcmask 64512   ;;  %s1672_s23 = smov 112   ;;  %s1673_s10 = smov 120  }
  0x9c   : > { %1290 = vmatpush3.bf16.msra.mxu1 %v1439_v1  ;;  %1282 = vmatpush3.bf16.msra.mxu0 %v1440_v2  ;;  %v1229_v7 = vld [vmem:[%s2091_s5] ss:$0 sm:$0xff]  ;;  %s1674_s20 = smov 104   ;;  %s1675_s2 = smov 96   ;;  %vm596_vm5 = vcmask 1043456   ;;  %vm765_vm6 = vcmask 130112  }
  0x9d   : > { %1291 = vmatprep.subr.bf16.mxu1 %v1670_v0  ;;  %1283 = vmatprep.subr.bf16.mxu0 %v1670_v0  ;;  %v1225_v8 = vld [vmem:[%s2089_s3] ss:$0 sm:$0xff]  ;;  %s1676_s18 = smov 80   ;;  %s1677_s26 = smov 72   ;;  %vm889_vm7 = vcmask 195712   ;;  %vm1013_vm8 = vcmask 261312  }
  0x9e   : > { %s1678_s17 = smov 88   ;;  %s1679_s4 = smov 8  }
  0x9f   : > { %s1680_s13 = smov 16   ;;  %s1681_s11 = smov 24  }
  0xa0   : > { %1292 = vmatpush3.bf16.msra.mxu1 %v1441_v3  ;;  %1284 = vmatpush3.bf16.msra.mxu0 %v1442_v4  ;;  %s1224_s29 = sshll.u32 %s1928_s25, 3  ;;  %p2122_p13 = scmp.ne.s32.totalorder %s2113_s22, 0 }
  0xa1   : > { %1303 = vmatprep.subr.bf16.mxu1 %v1670_v0  ;;  %1297 = vmatprep.subr.bf16.mxu0 %v1670_v0 }
  0xa3   : > { %1294 = vmatmul.mubr.msk.bf16.vlgmr.msra.gmra.mrb[0].mxu1 %vm412_vm1, %v459_v5  ;;  %1286 = vmatmul.mubr.msk.bf16.vlgmr.msra.gmra.mrb[0].mxu0 %vm412_vm1, %v388_v6 }
  0xa4   : > { %1305 = vmatprep.mubr.msk.bf16.mxu1 %vm1671_vm0, %v1670_v0  ;;  %1299 = vmatprep.mubr.msk.bf16.mxu0 %vm1671_vm0, %v1670_v0 }
 0x176   : > { %v520_v9 = vpop.f32.mrb[0].mxu1  ;;  %v450_v12 = vpop.f32.mrb[0].mxu0 }
 0x177   : > { %v521_v10 = vadd.f32 %v1229_v7, %v520_v9  ;;  %v1295_v11 = vpop.f32.mrb[1].mxu1  ;;  %v451_v14 = vadd.f32 %v1225_v8, %v450_v12  ;;  %v1287_v15 = vpop.f32.mrb[1].mxu0 }
 0x178   : > { %v523_v13 = vpop.f32.mrb[2].mxu1  ;;  %v453_v18 = vpop.f32.mrb[2].mxu0 }
 0x179   : > { %v526_v16 = vpack.c.bf16 %v521_v10, %v521_v10  ;;  %v1296_v17 = vpop.f32.mrb[3].mxu1  ;;  %v456_v19 = vpack.c.bf16 %v451_v14, %v451_v14  ;;  %v1288_v20 = vpop.f32.mrb[3].mxu0 }
 0x17b   : > { %528 = vst.msk [vmem:[#allocation3] sm:$0xf] %vm527_vm2, %v526_v16 }
 0x17c   : > { %458 = vst.msk [vmem:[#allocation2] sm:$0xf] %vm457_vm3, %v456_v19 }
 0x182   : > { %v530_v21 = vld [vmem:[#allocation3] sm:$0xf] }
 0x183   : > { %v1971_v22 = vld [vmem:[#allocation3] ss:$0 sps:$4 sm:$0xff]   ;;  %v536_v23 = vsel %vm531_vm4, %v530_v21, 0  ;;  %v1445_v25 = vld [vmem:[#allocation2] ss:$0 sps:$4 sm:$0xff]   ;;  %v1234_v30 = vcombine.low %v530_v21, %v530_v21 }
 0x184   : > { %v1974_v24 = vld [vmem:[#allocation3] ss:$0 sps:$4 sm:$0xff]   ;;  %1298 = vmatpush3.bf16.xpose.msra.mxu0 %v536_v23  ;;  %777 = vrot.lane.b32.xlu1 %v1971_v22, %s1672_s23  ;;  %v1446_v26 = vld [vmem:[#allocation2] ss:$0 sps:$4 sm:$0xff]  }
 0x185   : > { %653 = vrot.lane.b32.xlu0 %v1974_v24, %s1673_s10  ;;  %1309 = vmatprep.subr.bf16.mxu0 %v1670_v0  ;;  %v529_v27 = vld [vmem:[#allocation2] sm:$0xf]  ;;  %v1448_v29 = vld [vmem:[#allocation3] ss:$0 sps:$4 sm:$0xff]  }
 0x186   : > { %v1447_v28 = vld [vmem:[#allocation2] ss:$0 sps:$4 sm:$0xff]  }
 0x188   : > { %772 = vrot.lane.b32.xlu1 %v1445_v25, %s1672_s23  ;;  %s1253_s23 = sshll.u32 %s1749_s9, 7  ;;  %s1085_s9 = scalar_lea.sflag [#allocation7], %s1928_s25 }
 0x189   : > { %648 = vrot.lane.b32.xlu0 %v1446_v26, %s1673_s10  ;;  %s386_s10 = scalar_lea.vmem [#allocation13], %s1224_s29 }
 0x18b   : > { %1300 = vmatmul.mubr.msk.bf16.vlgmr.msra.gmra.mrb[4].mxu0 %vm531_vm4, %v529_v27 }
 0x18c   : > { %896 = vrot.lane.b32.xlu1 %v1447_v28, %s1674_s20  ;;  %1311 = vmatprep.mubr.msk.bf16.mxu0 %vm1671_vm0, %v1670_v0 }
 0x18d   : > { %901 = vrot.lane.b32.xlu0 %v1448_v29, %s1674_s20  ;;  %s1098_s20 = sshll.u32 %s386_s10, 4  ;;  %s2043_s20 = int_to_ptr.vmem [resolvable:$true] %s1098_s20 }
 0x190   : > { %591 = vrot.lane.b32.xlu1 %v1234_v30, %s1675_s2 }
 0x1f6   : > { %v778_v31 = vpop.permute.xlu1 %777 }
 0x1f7   : > { %v654_v32 = vpop.permute.xlu0 %653  ;;  %v783_v37 = vsel %vm531_vm4, %v778_v31, 0 }
 0x1f8   : > { %v659_v33 = vsel %vm531_vm4, %v654_v32, 0 }
 0x1f9   : > { %1310 = vmatpush3.bf16.xpose.msra.mxu0 %v659_v33 }
 0x1fa   : > { %v773_v34 = vpop.permute.xlu1 %772  ;;  %1321 = vmatprep.subr.bf16.mxu0 %v1670_v0 }
 0x1fb   : > { %v649_v36 = vpop.permute.xlu0 %648 }
 0x1fe   : > { %v897_v35 = vpop.permute.xlu1 %896 }
 0x1ff   : > { %v902_v40 = vpop.permute.xlu0 %901 }
 0x200   : > { %1312 = vmatmul.mubr.msk.bf16.vlgmr.msra.gmra.mrb[8].mxu0 %vm531_vm4, %v649_v36  ;;  %v907_v41 = vsel %vm531_vm4, %v902_v40, 0 }
 0x201   : > { %1322 = vmatpush3.bf16.xpose.msra.mxu0 %v783_v37  ;;  %1323 = vmatprep.mubr.msk.bf16.mxu0 %vm1671_vm0, %v1670_v0 }
 0x202   : > { %v592_v38 = vpop.permute.xlu1 %591  ;;  %1333 = vmatprep.subr.bf16.mxu0 %v1670_v0 }
 0x203   : > { %v598_v39 = vsel %vm596_vm5, %v592_v38, 0 }
 0x204   : > { %1304 = vmatpush3.bf16.msra.mxu1 %v598_v39 }
 0x205   : > { %1315 = vmatprep.subr.bf16.mxu1 %v1670_v0 }
 0x208   : > { %1324 = vmatmul.mubr.msk.bf16.vlgmr.msra.gmra.mrb[12].mxu0 %vm531_vm4, %v773_v34 }
 0x209   : > { %1334 = vmatpush3.bf16.xpose.msra.mxu0 %v907_v41  ;;  %1335 = vmatprep.mubr.msk.bf16.mxu0 %vm1671_vm0, %v1670_v0 }
 0x20a   : > { %1345 = vmatprep.subr.bf16.mxu0 %v1670_v0 }
 0x210   : > { %1336 = vmatmul.mubr.msk.bf16.vlgmr.msra.gmra.mrb[16].mxu0 %vm531_vm4, %v897_v35 }
 0x211   : > { %1349 = vmatprep.mubr.msk.bf16.mxu0 %vm1671_vm0, %v1670_v0 }
 0x25e   : > { %v572_v42 = vpop.f32.mrb[4].mxu0 }
 0x25f   : > { %v1301_v43 = vpop.f32.mrb[5].mxu0  ;;  %v578_v44 = vsel %vm531_vm4, %v572_v42, -inf }
 0x260   : > { %579 = vmax.xlane.f32.xlu0 %v578_v44  ;;  %v575_v45 = vpop.f32.mrb[6].mxu0 }
 0x261   : > { %v1302_v46 = vpop.f32.mrb[7].mxu0  ;;  %v1450_v45 = vld [vmem:[%s2092_s6] sm:$0xff]  }
 0x262   : > { %1346 = vmatpush3.bf16.msra.mxu0 %v1450_v45 }
 0x263   : > { %1347 = vmatprep.subr.bf16.mxu0 %v1670_v0 }
 0x2d3   : > { %v695_v47 = vpop.f32.mrb[8].mxu0 }
 0x2d4   : > { %v1313_v48 = vpop.f32.mrb[9].mxu0  ;;  %v701_v49 = vsel %vm531_vm4, %v695_v47, -inf }
 0x2d5   : > { %702 = vmax.xlane.f32.xlu1 %v701_v49  ;;  %v698_v50 = vpop.f32.mrb[10].mxu0  ;;  %v1451_v48 = vld [vmem:[%s2092_s6 + $0x8] sm:$0xff]  }
 0x2d6   : > { %v1314_v51 = vpop.f32.mrb[11].mxu0  ;;  %1348 = vmatpush3.bf16.msra.mxu0 %v1451_v48 }
 0x2db   : > { %v819_v52 = vpop.f32.mrb[12].mxu0 }
 0x2dc   : > { %v1325_v53 = vpop.f32.mrb[13].mxu0  ;;  %v825_v54 = vsel %vm531_vm4, %v819_v52, -inf }
 0x2dd   : > { %826 = vmax.xlane.f32.xlu0 %v825_v54  ;;  %v822_v55 = vpop.f32.mrb[14].mxu0 }
 0x2de   : > { %v1326_v56 = vpop.f32.mrb[15].mxu0 }
 0x2e3   : > { %v943_v57 = vpop.f32.mrb[16].mxu0 }
 0x2e4   : > { %v1337_v58 = vpop.f32.mrb[17].mxu0  ;;  %v949_v59 = vsel %vm531_vm4, %v943_v57, -inf }
 0x2e5   : > { %950 = vmax.xlane.f32.xlu0 %v949_v59  ;;  %v946_v60 = vpop.f32.mrb[18].mxu0 }
 0x2e6   : > { %835 = vrot.lane.b32.xlu1 %v1971_v22, %s1676_s18  ;;  %v1338_v61 = vpop.f32.mrb[19].mxu0 }
 0x2ea   : > { %959 = vrot.lane.b32.xlu1 %v1448_v29, %s1677_s26  ;;  %s2041_s26 = scalar_lea.hbm %s2094_s8, %s1253_s23 }
 0x2ed   : > { %v580_v62 = vpop.xlane.xlu0 %579 }
 0x2ee   : > { %v581_v63 = vsub.f32 %v572_v42, %v580_v62 }
 0x2f0   : > { %v582_v1 = vmul.f32 1.442695, %v581_v63  ;;  %v1248_v63 = vld [vmem:[%s2093_s7] ss:$0 sm:$0xff] }
 0x2f2   : > { %1452 = vpow2.f32 %v582_v1 }
 0x2fb   : > { %711 = vrot.lane.b32.xlu0 %v1974_v24, %s1678_s17  ;;  %s1584_s17 = scalar_lea.vmem %s2043_s20, 128 }
 0x2fc   : > { %v1453_v2 = vpop.eup %1452  ;;  %p1585_p2 = scmp.ne.s32.totalorder %s2043_s20, %s1584_s17 }
 0x2fd   : > { %v587_v3 = vpack.c.bf16 %v1453_v2, %v1453_v2  ;;  %v584_v27 = vsel %vm531_vm4, %v1453_v2, 0.0 }
 0x2fe   : > { %p1586_p6 = pnand %p1585_p2, %p2122_p13 }
 0x2ff   : > { %1306 = vmatmul.mubr.msk.bf16.vlgmr.msra.gmra.mrb[4].mxu1 %vm531_vm4, %v587_v3 }
 0x300   : > { %1317 = vmatprep.mubr.msk.bf16.mxu1 %vm1671_vm0, %v1670_v0  ;;  %p1587_p10 = pneg %p1586_p6 }
 0x362   : > { %v703_v4 = vpop.xlane.xlu1 %702 }
 0x363   : > { %v704_v5 = vsub.f32 %v695_v47, %v703_v4 }
 0x365   : > { %v705_v6 = vmul.f32 1.442695, %v704_v5 }
 0x366   : > { %v836_v17 = vpop.permute.xlu1 %835 }
 0x367   : > { %1454 = vpow2.f32 %v705_v6  ;;  %v841_v21 = vsel %vm596_vm5, %v836_v17, 0 }
 0x36a   : > { %v827_v7 = vpop.xlane.xlu0 %826  ;;  %v960_v22 = vpop.permute.xlu1 %959 }
 0x36b   : > { %v828_v8 = vsub.f32 %v819_v52, %v827_v7  ;;  %v965_v26 = vsel %vm596_vm5, %v960_v22, 0 }
 0x36d   : > { %v829_v9 = vmul.f32 1.442695, %v828_v8 }
 0x36f   : > { %1456 = vpow2.f32 %v829_v9 }
 0x371   : > { %v1455_v10 = vpop.eup %1454 }
 0x372   : > { %v951_v11 = vpop.xlane.xlu0 %950  ;;  %v707_v12 = vsel %vm531_vm4, %v1455_v10, 0.0  ;;  %v710_v19 = vpack.c.bf16 %v1455_v10, %v1455_v10 }
 0x373   : > { %v952_v13 = vsub.f32 %v943_v57, %v951_v11  ;;  %708 = vadd.xlane.f32.xlu0 %v707_v12 }
 0x375   : > { %v953_v14 = vmul.f32 1.442695, %v952_v13 }
 0x376   : > { %v712_v15 = vpop.permute.xlu0 %711 }
 0x377   : > { %1458 = vpow2.f32 %v953_v14  ;;  %v717_v16 = vsel %vm596_vm5, %v712_v15, 0 }
 0x378   : > { %1316 = vmatpush3.bf16.msra.mxu1 %v717_v16 }
 0x379   : > { %v1457_v18 = vpop.eup %1456  ;;  %1327 = vmatprep.subr.bf16.mxu1 %v1670_v0 }
 0x37a   : > { %v831_v20 = vsel %vm531_vm4, %v1457_v18, 0.0  ;;  %v834_v24 = vpack.c.bf16 %v1457_v18, %v1457_v18 }
 0x37b   : > { %832 = vadd.xlane.f32.xlu1 %v831_v20  ;;  %1318 = vmatmul.mubr.msk.bf16.vlgmr.msra.gmra.mrb[8].mxu1 %vm531_vm4, %v710_v19 }
 0x37c   : > { %1328 = vmatpush3.bf16.msra.mxu1 %v841_v21  ;;  %1329 = vmatprep.mubr.msk.bf16.mxu1 %vm1671_vm0, %v1670_v0 }
 0x37d   : > { %1339 = vmatprep.subr.bf16.mxu1 %v1670_v0 }
 0x381   : > { %v1459_v23 = vpop.eup %1458 }
 0x382   : > { %v955_v25 = vsel %vm531_vm4, %v1459_v23, 0.0  ;;  %v958_v28 = vpack.c.bf16 %v1459_v23, %v1459_v23 }
 0x383   : > { %956 = vadd.xlane.f32.xlu0 %v955_v25  ;;  %1330 = vmatmul.mubr.msk.bf16.vlgmr.msra.gmra.mrb[12].mxu1 %vm531_vm4, %v834_v24 }
 0x384   : > { %1340 = vmatpush3.bf16.msra.mxu1 %v965_v26  ;;  %1341 = vmatprep.mubr.msk.bf16.mxu1 %vm1671_vm0, %v1670_v0 }
 0x387   : > { %585 = vadd.xlane.f32.xlu0 %v584_v27 }
 0x38b   : > { %1342 = vmatmul.mubr.msk.bf16.vlgmr.msra.gmra.mrb[16].mxu1 %vm531_vm4, %v958_v28 }
 0x3d2   : > { %v634_v29 = vpop.f32.mrb[4].mxu1 }
 0x3d3   : > { %v1307_v30 = vpop.f32.mrb[5].mxu1 }
 0x3d4   : > { %v637_v31 = vpop.f32.mrb[6].mxu1 }
 0x3d5   : > { %v1308_v32 = vpop.f32.mrb[7].mxu1 }
 0x400   : > { %v709_v33 = vpop.xlane.xlu0 %708 }
 0x408   : > { %v833_v38 = vpop.xlane.xlu1 %832 }
 0x410   : > { %v957_v34 = vpop.xlane.xlu0 %956 }
 0x414   : > { %v586_v35 = vpop.xlane.xlu0 %585 }
 0x415   : > { %1460 = vrcp.f32 %v586_v35 }
 0x416   : > { %1462 = vrcp.f32 %v709_v33 }
 0x417   : > { %1464 = vrcp.f32 %v833_v38 }
 0x418   : > { %1466 = vrcp.f32 %v957_v34 }
 0x41f   : > { %v1461_v36 = vpop.eup %1460 }
 0x420   : > { %v641_v37 = vmul.f32 %v1461_v36, %v634_v29  ;;  %v1463_v39 = vpop.eup %1462 }
 0x421   : > { %v1465_v46 = vpop.eup %1464 }
 0x422   : > { %642 = vst.msk [vmem:[#allocation4] sm:$0xff] %vm531_vm4, %v641_v37  ;;  %v1467_v53 = vpop.eup %1466 }
 0x44e   : > { %v753_v40 = vpop.f32.mrb[8].mxu1 }
 0x44f   : > { %v760_v41 = vmul.f32 %v1463_v39, %v753_v40  ;;  %v1319_v42 = vpop.f32.mrb[9].mxu1 }
 0x450   : > { %v756_v43 = vpop.f32.mrb[10].mxu1 }
 0x451   : > { %v1320_v44 = vpop.f32.mrb[11].mxu1  ;;  %762 = vrot.lane.b32.xlu1 %v760_v41, %s1679_s4  ;;  %s1682_s4 = smov [#allocation13]  }
 0x452   : > { %s1588_s15 = sshll.u32 %s1682_s4, 4  ;;  %s1589_s15 = int_to_ptr.vmem [resolvable:$false] %s1588_s15 }
 0x453   : > { %s1590_s16 = scalar_lea.vmem %s1589_s15, 256  ;;  %p1591_p4 = scmp.lt.s32.totalorder %s2043_s20, %s1589_s15 }
 0x454   : > { %p1592_p5 = scmp.lt.s32.totalorder %s1590_s16, %s1584_s17 }
 0x456   : > { %v877_v47 = vpop.f32.mrb[12].mxu1  ;;  %p1593_p3 = por %p1592_p5, %p1591_p4 }
 0x457   : > { %v884_v49 = vmul.f32 %v1465_v46, %v877_v47  ;;  %v1331_v50 = vpop.f32.mrb[13].mxu1 }
 0x458   : > { %v880_v51 = vpop.f32.mrb[14].mxu1  ;;  %p1594_p7 = pnand %p1593_p3, %p1587_p10 }
 0x459   : > { %886 = vrot.lane.b32.xlu0 %v884_v49, %s1680_s13  ;;  %v1332_v52 = vpop.f32.mrb[15].mxu1 }
 0x45e   : > { %v1001_v54 = vpop.f32.mrb[16].mxu1 }
 0x45f   : > { %v1008_v55 = vmul.f32 %v1467_v53, %v1001_v54  ;;  %v1343_v56 = vpop.f32.mrb[17].mxu1 }
 0x460   : > { %v1004_v57 = vpop.f32.mrb[18].mxu1 }
 0x461   : > { %v1344_v58 = vpop.f32.mrb[19].mxu1  ;;  %1010 = vrot.lane.b32.xlu1 %v1008_v55, %s1681_s11 }
 0x4c3   : > { %v763_v59 = vpop.permute.xlu1 %762 }
 0x4c4   : > { %766 = vst.msk [vmem:[#allocation4] sm:$0xff] %vm765_vm6, %v763_v59 }
 0x4cb   : > { %v887_v0 = vpop.permute.xlu0 %886 }
 0x4cc   : > { %890 = vst.msk [vmem:[#allocation4] sm:$0xff] %vm889_vm7, %v887_v0 }
 0x4d3   : > { %v1011_v60 = vpop.permute.xlu1 %1010 }
 0x4d4   : > { %1014 = vst.msk [vmem:[#allocation4] sm:$0xff] %vm1013_vm8, %v1011_v60 }
 0x4db   : > { %v1015_v61 = vld [vmem:[#allocation4] sm:$0xff] }
 0x4dc   : > { %v1016_v62 = vpack.c.bf16 %v1015_v61, %v1015_v61 }
 0x4de   : > { %1350 = vmatmul.mubr.msk.bf16.vlgmr.msra.gmra.mrb[20].mxu0 %vm412_vm1, %v1016_v62 }
 0x5b1   : > { %v1077_v1 = vpop.f32.mrb[20].mxu0 }
 0x5b2   : > { %v1078_v2 = vadd.f32 %v1248_v63, %v1077_v1  ;;  %v1351_v3 = vpop.f32.mrb[21].mxu0 }
 0x5b3   : > { %v1080_v4 = vpop.f32.mrb[22].mxu0 }
 0x5b4   : > { %v1352_v5 = vpop.f32.mrb[23].mxu0  ;;  %1083 = vst.msk [vmem:[%s386_s10] sm:$0xff] %vm412_vm1, %v1078_v2 }
 0x5b5   : > { %1597 = shalt.err (!%p1594_p7)
}
 0x5b6   : > { %s1598_s25 = scalar_lea.hbm %s2041_s26, 128  ;;  %s1602_s13 = scalar_lea.hbm %s2094_s8, 256 }
 0x5b7   : > { %p1599_p1 = scmp.ne.s32.totalorder %s2041_s26, %s1598_s25  ;;  %p1603_p11 = scmp.lt.u32.totalorder %s2041_s26, %s2094_s8 }
 0x5b8   : > { %p1604_p9 = scmp.lt.u32.totalorder %s1602_s13, %s1598_s25  ;;  %p1606_p2 = scmp.lt.u32.totalorder %s1598_s25, %s2041_s26 }
 0x5b9   : > { %p1600_p0 = pnand %p1599_p1, %p2122_p13 }
 0x5ba   : > { %p1605_p12 = por %p1604_p9, %p1603_p11 }
 0x5bb   : > { %p1601_p8 = pneg %p1600_p0 }
 0x5bc   : > { %p1607_p6 = por %p1606_p2, %p1605_p12 }
 0x5be   : > { %p1608_p10 = pnand %p1607_p6, %p1601_p8 }
 0x5c0   : > { %1611 = shalt.err (!%p1608_p10)
}
 0x5c1   : > { %1365 = dma.vmem_to_hbm [thread:$0]  (%p2122_p13), %s2043_s20, 128, %s2041_s26, %s1085_s9  }
 0x5c2 PF: > { %s1110_s21 = sand.u32 1, %s1650_s27   ;;  %p2123_p4 = scmp.ne.s32.totalorder %s2106_s12, 0 }
 0x5c3   : > { %p2124_p5 = scmp.ge.s32.totalorder %s1662_s30, 2  ;;  %s1111_s24 = scalar_lea.sflag [#allocation7], %s1110_s21 }
 0x5c5   : > { %p1382_p3 = pnand %p2124_p5, %p2123_p4 }
 0x5c7   : > { %1645 = dma.done.wait (!%p1382_p3), %s1111_s24, 128  }
 0x5c8   : > { %1647 = vsyncadd (!%p1382_p3), %s1111_s24, 4294967168  ;;  %s2125_s30 = sld [smem:[#allocation20_spill]]  ;;  %s2126_s23 = sld [smem:[#allocation19_spill]] }
 0x5c9   : > { %s2127_s29 = sld [smem:[#allocation21_spill]]  ;;  %s2128_s27 = smov %s1654_s28 }
 0x5ce   : > { %p25_p7 = scmp.ge.s32.totalorder %s2125_s30, 4   ;;  %s2129_s28 = smov %s2126_s23 }
 0x5d0   :  { %27 = sbr.rel (!%p25_p7) target bundleno = 11 (0xb), region = 118 }
 0x5d7   :  { %1116 = vsyncpa [#allocation6], 1 }
 0x5d8   :  { %1118 = vsyncpa [#allocation6 + $0x1], 1 }
 0x5d9   :  { %1119 = vsyncpa [#allocation9], 1 }
 0x5da   :  { %1121 = vsyncpa [#allocation9 + $0x1], 1 }
 0x5db   :  { %1122 = vsyncpa [#allocation12], 1 }
 0x5dc   :  { %1123 = vsyncpa [#allocation7], 1 }
 0x5dd   :  { %1125 = vsyncpa [#allocation7 + $0x1], 1 }

</bundles_post_ra>
